<compile_context>
chip_gen: v7x
topology: tpu7x:2x2x1
jax: 0.10.0
libtpu: 0.0.40
codegen_flags: <defaults>
</compile_context>

<pallas_src>
import jax
import jax.numpy as jnp
from jax.experimental import pallas as pl
from jax.experimental.pallas import tpu as pltpu


def _round_up(n, m):
    return ((n + m - 1) // m) * m


def vqa_kernel(x_ref,
               w1_ref, b1_ref, g1_ref, be1_ref,
               w2_ref, b2_ref, g2_ref, be2_ref,
               cw_ref, cb_ref,
               out_ref):
    eps = 1e-5
    x = x_ref[...]                                   # bf16 activations

    # ---- block1: Linear -> LayerNorm -> ReLU -> Dropout(eval: identity) ----
    h = jnp.dot(x, w1_ref[...], preferred_element_type=jnp.float32) + b1_ref[...]
    n1 = h.shape[-1]
    s1 = jnp.sum(h, axis=-1, keepdims=True)          # one-pass LN statistics
    q1 = jnp.sum(h * h, axis=-1, keepdims=True)
    mu1 = s1 / n1
    var1 = jnp.maximum(q1 / n1 - mu1 * mu1, 0.0)
    h = (h - mu1) * jax.lax.rsqrt(var1 + eps) * g1_ref[...] + be1_ref[...]
    h = jnp.maximum(h, 0.0)
    # TODO(synk): Dropout(p=0.5) is identity in eval mode; training-mode RNG
    # masking (pltpu.prng_*) not implemented.

    # ---- block2: Linear -> LayerNorm -> ReLU -> Dropout(eval: identity) ----
    h2 = jnp.dot(h.astype(x.dtype), w2_ref[...],
                 preferred_element_type=jnp.float32) + b2_ref[...]
    n2 = h2.shape[-1]
    s2 = jnp.sum(h2, axis=-1, keepdims=True)
    q2 = jnp.sum(h2 * h2, axis=-1, keepdims=True)
    mu2 = s2 / n2
    var2 = jnp.maximum(q2 / n2 - mu2 * mu2, 0.0)
    h2 = (h2 - mu2) * jax.lax.rsqrt(var2 + eps) * g2_ref[...] + be2_ref[...]
    h2 = jnp.maximum(h2, 0.0)

    # ---- attention over the unsqueezed step dim (size 1) ----
    # softmax(eij, dim=step) with step == 1 is exactly 1.0, so
    # attended == h2.  The score matmul / exp is dead work and is elided.
    attended = h2

    # ---- classifier (lane-dense, output padded to multiple of 128) ----
    out = jnp.dot(attended.astype(x.dtype), cw_ref[...],
                  preferred_element_type=jnp.float32) + cb_ref[...]
    out_ref[...] = out.astype(out_ref.dtype)


def vqa_forward(x, params, *, bm=None, matmul_dtype=jnp.bfloat16, lane=128):
    B, input_dim = x.shape
    hidden_dim = params["w1"].shape[1]
    H2 = 2 * hidden_dim
    output_dim = params["cw"].shape[1]
    out_dtype = x.dtype

    # ---- tiling: large batch tile, padded batch, lane-dense padded output ----
    if bm is None:
        bm = min(512, _round_up(B, 8))
    bm = max(8, _round_up(bm, 8))
    Bp = _round_up(B, bm)
    out_p = _round_up(output_dim, lane)

    # ---- prepare operands (bf16 matmul inputs, f32 vectors, padding) ----
    xk = x.astype(matmul_dtype)
    if Bp != B:
        xk = jnp.pad(xk, ((0, Bp - B), (0, 0)))

    w1 = params["w1"].astype(matmul_dtype)
    w2 = params["w2"].astype(matmul_dtype)
    cw = params["cw"].astype(matmul_dtype)
    cb = params["cb"].astype(jnp.float32)
    if out_p != output_dim:
        cw = jnp.pad(cw, ((0, 0), (0, out_p - output_dim)))
        cb = jnp.pad(cb, ((0, 0), (0, out_p - output_dim)))

    b1 = params["b1"].astype(jnp.float32)
    g1 = params["g1"].astype(jnp.float32)
    be1 = params["be1"].astype(jnp.float32)
    b2 = params["b2"].astype(jnp.float32)
    g2 = params["g2"].astype(jnp.float32)
    be2 = params["be2"].astype(jnp.float32)

    def rep(shape):
        nd = len(shape)
        return pl.BlockSpec(shape, lambda i, _nd=nd: (0,) * _nd)

    in_specs = [
        pl.BlockSpec((bm, input_dim), lambda i: (i, 0)),   # x, tiled over batch
        rep((input_dim, hidden_dim)), rep((1, hidden_dim)),
        rep((1, hidden_dim)), rep((1, hidden_dim)),
        rep((hidden_dim, H2)), rep((1, H2)),
        rep((1, H2)), rep((1, H2)),
        rep((H2, out_p)), rep((1, out_p)),
    ]
    out_specs = pl.BlockSpec((bm, out_p), lambda i: (i, 0))

    # ---- VMEM budget (double-buffered blocks); cap for v7x (64 MiB VMEM) ----
    w_bytes = jnp.dtype(matmul_dtype).itemsize
    weight_bytes = (input_dim * hidden_dim + hidden_dim * H2 + H2 * out_p) * w_bytes
    vec_bytes = (3 * hidden_dim + 3 * H2 + out_p) * 4
    tile_bytes = bm * input_dim * w_bytes + bm * out_p * 4
    vmem_est = 2 * (weight_bytes + vec_bytes + tile_bytes)
    vmem_limit = int(min(56 * 1024 * 1024,
                         max(32 * 1024 * 1024, vmem_est + 4 * 1024 * 1024)))

    flops = 2 * Bp * (input_dim * hidden_dim + hidden_dim * H2 + H2 * out_p)
    bytes_accessed = (Bp * input_dim * w_bytes + weight_bytes + vec_bytes
                      + Bp * out_p * 4)

    out = pl.pallas_call(
        vqa_kernel,
        out_shape=jax.ShapeDtypeStruct((Bp, out_p), out_dtype),
        grid_spec=pltpu.PrefetchScalarGridSpec(
            num_scalar_prefetch=0,
            grid=(Bp // bm,),
            in_specs=in_specs,
            out_specs=out_specs,
        ),
        compiler_params=pltpu.CompilerParams(
            dimension_semantics=("parallel",),
            vmem_limit_bytes=vmem_limit,
        ),
        cost_estimate=pl.CostEstimate(
            flops=flops, transcendentals=0, bytes_accessed=bytes_accessed),
    )(xk, w1, b1, g1, be1, w2, b2, g2, be2, cw, cb)

    return out[:B, :output_dim]


def init_params(key, input_dim, hidden_dim, output_dim, dtype=jnp.float32):
    """Deterministic PyTorch-Linear-style uniform init (synthetic weights)."""
    H2 = 2 * hidden_dim

    def linear(k, fan_in, fan_out):
        bound = 1.0 / (float(fan_in) ** 0.5)
        kw, kb = jax.random.split(k)
        w = jax.random.uniform(kw, (fan_in, fan_out), dtype, -bound, bound)
        b = jax.random.uniform(kb, (1, fan_out), dtype, -bound, bound)
        return w, b

    k1, k2, k3, k4 = jax.random.split(key, 4)
    w1, b1 = linear(k1, input_dim, hidden_dim)
    w2, b2 = linear(k2, hidden_dim, H2)
    aw, ab = linear(k3, H2, 1)           # attention params (softmax over the
    cw, cb = linear(k4, H2, output_dim)  # singleton step dim folds to 1.0)
    return {
        "w1": w1, "b1": b1,
        "g1": jnp.ones((1, hidden_dim), dtype), "be1": jnp.zeros((1, hidden_dim), dtype),
        "w2": w2, "b2": b2,
        "g2": jnp.ones((1, H2), dtype), "be2": jnp.zeros((1, H2), dtype),
        "aw": aw, "ab": ab,
        "cw": cw, "cb": cb,
    }


def reference_forward(x, p, *, matmul_dtype=jnp.float32):
    """Pure-JAX reference mirroring the PyTorch forward (eval mode),
    including the full attention path.  matmul_dtype lets the reference
    mirror the kernel's bf16 matmul inputs (f32 accumulation)."""
    eps = 1e-5

    def mm(a, w):
        return jnp.dot(a.astype(matmul_dtype), w.astype(matmul_dtype),
                       preferred_element_type=jnp.float32)

    def layernorm(h, g, b):
        mu = jnp.mean(h, axis=-1, keepdims=True)
        var = jnp.mean(jnp.square(h - mu), axis=-1, keepdims=True)
        return (h - mu) / jnp.sqrt(var + eps) * g + b

    h = jnp.maximum(layernorm(mm(x, p["w1"]) + p["b1"], p["g1"], p["be1"]), 0.0)
    h2 = jnp.maximum(layernorm(mm(h, p["w2"]) + p["b2"], p["g2"], p["be2"]), 0.0)
    # attention over singleton step dim
    x3 = h2[:, None, :]                                   # (B, 1, 2H)
    eij = x3 @ p["aw"] + p["ab"]                          # (B, 1, 1)
    a = jax.nn.softmax(eij, axis=1)                       # == 1.0
    attended = (x3 * a).sum(axis=1)                       # (B, 2H)
    return mm(attended, p["cw"]) + p["cb"]


if __name__ == "__main__":
    B, input_dim, hidden_dim, output_dim = 16, 32, 32, 16

    key = jax.random.PRNGKey(0)
    kx, kp = jax.random.split(key)
    x = jax.random.normal(kx, (B, input_dim), jnp.float32)
    params = init_params(kp, input_dim, hidden_dim, output_dim)

    out = vqa_forward(x, params)
    out = jax.block_until_ready(out)
    assert out.shape == (B, output_dim)

    # Reference with matching bf16 matmul inputs (f32 accumulation).
    ref = reference_forward(x, params, matmul_dtype=jnp.bfloat16)
    assert jnp.allclose(out, ref, atol=3e-3, rtol=3e-3), "mismatch vs reference"
    print("KERNEL_OK")
</pallas_src>

<mosaic_0001>
module attributes {stable_mosaic.version = 11 : i64} {
  func.func @vqa_kernel(%arg0: i32, %arg1: memref<16x32xbf16, #tpu.memory_space<vmem>>, %arg2: memref<32x32xbf16, #tpu.memory_space<vmem>>, %arg3: memref<1x32xf32, #tpu.memory_space<vmem>>, %arg4: memref<1x32xf32, #tpu.memory_space<vmem>>, %arg5: memref<1x32xf32, #tpu.memory_space<vmem>>, %arg6: memref<32x64xbf16, #tpu.memory_space<vmem>>, %arg7: memref<1x64xf32, #tpu.memory_space<vmem>>, %arg8: memref<1x64xf32, #tpu.memory_space<vmem>>, %arg9: memref<1x64xf32, #tpu.memory_space<vmem>>, %arg10: memref<64x128xbf16, #tpu.memory_space<vmem>>, %arg11: memref<1x128xf32, #tpu.memory_space<vmem>>, %arg12: memref<16x128xf32, #tpu.memory_space<vmem>>) attributes {dimension_semantics = [#tpu.dimension_semantics<parallel>], iteration_bounds = array<i64: 1>, scalar_prefetch = 0 : i64, scratch_operands = 0 : i64, tpu.core_type = #tpu.core_type<tc>, window_params = [{transform_indices = @transform_0, window_bounds = array<i64: 16, 32>}, {pipeline_mode = #tpu.pipeline_mode<synchronous>, transform_indices = @transform_1, window_bounds = array<i64: 32, 32>}, {pipeline_mode = #tpu.pipeline_mode<synchronous>, transform_indices = @transform_2, window_bounds = array<i64: 1, 32>}, {pipeline_mode = #tpu.pipeline_mode<synchronous>, transform_indices = @transform_3, window_bounds = array<i64: 1, 32>}, {pipeline_mode = #tpu.pipeline_mode<synchronous>, transform_indices = @transform_4, window_bounds = array<i64: 1, 32>}, {pipeline_mode = #tpu.pipeline_mode<synchronous>, transform_indices = @transform_5, window_bounds = array<i64: 32, 64>}, {pipeline_mode = #tpu.pipeline_mode<synchronous>, transform_indices = @transform_6, window_bounds = array<i64: 1, 64>}, {pipeline_mode = #tpu.pipeline_mode<synchronous>, transform_indices = @transform_7, window_bounds = array<i64: 1, 64>}, {pipeline_mode = #tpu.pipeline_mode<synchronous>, transform_indices = @transform_8, window_bounds = array<i64: 1, 64>}, {pipeline_mode = #tpu.pipeline_mode<synchronous>, transform_indices = @transform_9, window_bounds = array<i64: 64, 128>}, {pipeline_mode = #tpu.pipeline_mode<synchronous>, transform_indices = @transform_10, window_bounds = array<i64: 1, 128>}, {transform_indices = @transform_11, window_bounds = array<i64: 16, 128>}]} {
    %c0 = arith.constant 0 : index
    %c0_0 = arith.constant 0 : index
    %0 = vector.load %arg1[%c0, %c0_0] : memref<16x32xbf16, #tpu.memory_space<vmem>>, vector<16x32xbf16>
    %c0_1 = arith.constant 0 : index
    %c0_2 = arith.constant 0 : index
    %1 = vector.load %arg2[%c0_1, %c0_2] : memref<32x32xbf16, #tpu.memory_space<vmem>>, vector<32x32xbf16>
    %cst = arith.constant dense<0.000000e+00> : vector<16x32xf32>
    %2 = tpu.matmul %0, %1, %cst {dimension_numbers = #tpu.dot_dimension_numbers<[1], [0], [0], [1], [0, 0, 1, 1], [], []>} : vector<16x32xbf16>, vector<32x32xbf16>, vector<16x32xf32> -> vector<16x32xf32>
    %c0_3 = arith.constant 0 : index
    %c0_4 = arith.constant 0 : index
    %3 = vector.load %arg3[%c0_3, %c0_4] : memref<1x32xf32, #tpu.memory_space<vmem>>, vector<1x32xf32>
    %4 = vector.broadcast %3 : vector<1x32xf32> to vector<16x32xf32>
    %5 = arith.addf %2, %4 : vector<16x32xf32>
    %cst_5 = arith.constant dense<0.000000e+00> : vector<16xf32>
    %6 = vector.multi_reduction <add>, %5, %cst_5 [1] : vector<16x32xf32> to vector<16xf32>
    %7 = vector.shape_cast %6 : vector<16xf32> to vector<16x1xf32>
    %8 = arith.mulf %5, %5 : vector<16x32xf32>
    %cst_6 = arith.constant dense<0.000000e+00> : vector<16xf32>
    %9 = vector.multi_reduction <add>, %8, %cst_6 [1] : vector<16x32xf32> to vector<16xf32>
    %10 = vector.shape_cast %9 : vector<16xf32> to vector<16x1xf32>
    %cst_7 = arith.constant 3.200000e+01 : f32
    %11 = vector.broadcast %cst_7 : f32 to vector<16x1xf32>
    %12 = arith.divf %7, %11 : vector<16x1xf32>
    %cst_8 = arith.constant 3.200000e+01 : f32
    %13 = vector.broadcast %cst_8 : f32 to vector<16x1xf32>
    %14 = arith.divf %10, %13 : vector<16x1xf32>
    %15 = arith.mulf %12, %12 : vector<16x1xf32>
    %16 = arith.subf %14, %15 : vector<16x1xf32>
    %cst_9 = arith.constant 0.000000e+00 : f32
    %17 = vector.broadcast %cst_9 : f32 to vector<16x1xf32>
    %18 = arith.maximumf %16, %17 : vector<16x1xf32>
    %19 = vector.broadcast %12 : vector<16x1xf32> to vector<16x32xf32>
    %20 = arith.subf %5, %19 : vector<16x32xf32>
    %cst_10 = arith.constant 9.99999974E-6 : f32
    %21 = vector.broadcast %cst_10 : f32 to vector<16x1xf32>
    %22 = arith.addf %18, %21 : vector<16x1xf32>
    %23 = math.rsqrt %22 : vector<16x1xf32>
    %24 = vector.broadcast %23 : vector<16x1xf32> to vector<16x32xf32>
    %25 = arith.mulf %20, %24 : vector<16x32xf32>
    %c0_11 = arith.constant 0 : index
    %c0_12 = arith.constant 0 : index
    %26 = vector.load %arg4[%c0_11, %c0_12] : memref<1x32xf32, #tpu.memory_space<vmem>>, vector<1x32xf32>
    %27 = vector.broadcast %26 : vector<1x32xf32> to vector<16x32xf32>
    %28 = arith.mulf %25, %27 : vector<16x32xf32>
    %c0_13 = arith.constant 0 : index
    %c0_14 = arith.constant 0 : index
    %29 = vector.load %arg5[%c0_13, %c0_14] : memref<1x32xf32, #tpu.memory_space<vmem>>, vector<1x32xf32>
    %30 = vector.broadcast %29 : vector<1x32xf32> to vector<16x32xf32>
    %31 = arith.addf %28, %30 : vector<16x32xf32>
    %cst_15 = arith.constant 0.000000e+00 : f32
    %32 = vector.broadcast %cst_15 : f32 to vector<16x32xf32>
    %33 = arith.maximumf %31, %32 : vector<16x32xf32>
    %34 = arith.truncf %33 : vector<16x32xf32> to vector<16x32xbf16>
    %c0_16 = arith.constant 0 : index
    %c0_17 = arith.constant 0 : index
    %35 = vector.load %arg6[%c0_16, %c0_17] : memref<32x64xbf16, #tpu.memory_space<vmem>>, vector<32x64xbf16>
    %cst_18 = arith.constant dense<0.000000e+00> : vector<16x64xf32>
    %36 = tpu.matmul %34, %35, %cst_18 {dimension_numbers = #tpu.dot_dimension_numbers<[1], [0], [0], [1], [0, 0, 1, 1], [], []>} : vector<16x32xbf16>, vector<32x64xbf16>, vector<16x64xf32> -> vector<16x64xf32>
    %c0_19 = arith.constant 0 : index
    %c0_20 = arith.constant 0 : index
    %37 = vector.load %arg7[%c0_19, %c0_20] : memref<1x64xf32, #tpu.memory_space<vmem>>, vector<1x64xf32>
    %38 = vector.broadcast %37 : vector<1x64xf32> to vector<16x64xf32>
    %39 = arith.addf %36, %38 : vector<16x64xf32>
    %cst_21 = arith.constant dense<0.000000e+00> : vector<16xf32>
    %40 = vector.multi_reduction <add>, %39, %cst_21 [1] : vector<16x64xf32> to vector<16xf32>
    %41 = vector.shape_cast %40 : vector<16xf32> to vector<16x1xf32>
    %42 = arith.mulf %39, %39 : vector<16x64xf32>
    %cst_22 = arith.constant dense<0.000000e+00> : vector<16xf32>
    %43 = vector.multi_reduction <add>, %42, %cst_22 [1] : vector<16x64xf32> to vector<16xf32>
    %44 = vector.shape_cast %43 : vector<16xf32> to vector<16x1xf32>
    %cst_23 = arith.constant 6.400000e+01 : f32
    %45 = vector.broadcast %cst_23 : f32 to vector<16x1xf32>
    %46 = arith.divf %41, %45 : vector<16x1xf32>
    %cst_24 = arith.constant 6.400000e+01 : f32
    %47 = vector.broadcast %cst_24 : f32 to vector<16x1xf32>
    %48 = arith.divf %44, %47 : vector<16x1xf32>
    %49 = arith.mulf %46, %46 : vector<16x1xf32>
    %50 = arith.subf %48, %49 : vector<16x1xf32>
    %cst_25 = arith.constant 0.000000e+00 : f32
    %51 = vector.broadcast %cst_25 : f32 to vector<16x1xf32>
    %52 = arith.maximumf %50, %51 : vector<16x1xf32>
    %53 = vector.broadcast %46 : vector<16x1xf32> to vector<16x64xf32>
    %54 = arith.subf %39, %53 : vector<16x64xf32>
    %cst_26 = arith.constant 9.99999974E-6 : f32
    %55 = vector.broadcast %cst_26 : f32 to vector<16x1xf32>
    %56 = arith.addf %52, %55 : vector<16x1xf32>
    %57 = math.rsqrt %56 : vector<16x1xf32>
    %58 = vector.broadcast %57 : vector<16x1xf32> to vector<16x64xf32>
    %59 = arith.mulf %54, %58 : vector<16x64xf32>
    %c0_27 = arith.constant 0 : index
    %c0_28 = arith.constant 0 : index
    %60 = vector.load %arg8[%c0_27, %c0_28] : memref<1x64xf32, #tpu.memory_space<vmem>>, vector<1x64xf32>
    %61 = vector.broadcast %60 : vector<1x64xf32> to vector<16x64xf32>
    %62 = arith.mulf %59, %61 : vector<16x64xf32>
    %c0_29 = arith.constant 0 : index
    %c0_30 = arith.constant 0 : index
    %63 = vector.load %arg9[%c0_29, %c0_30] : memref<1x64xf32, #tpu.memory_space<vmem>>, vector<1x64xf32>
    %64 = vector.broadcast %63 : vector<1x64xf32> to vector<16x64xf32>
    %65 = arith.addf %62, %64 : vector<16x64xf32>
    %cst_31 = arith.constant 0.000000e+00 : f32
    %66 = vector.broadcast %cst_31 : f32 to vector<16x64xf32>
    %67 = arith.maximumf %65, %66 : vector<16x64xf32>
    %68 = arith.truncf %67 : vector<16x64xf32> to vector<16x64xbf16>
    %c0_32 = arith.constant 0 : index
    %c0_33 = arith.constant 0 : index
    %69 = vector.load %arg10[%c0_32, %c0_33] : memref<64x128xbf16, #tpu.memory_space<vmem>>, vector<64x128xbf16>
    %cst_34 = arith.constant dense<0.000000e+00> : vector<16x128xf32>
    %70 = tpu.matmul %68, %69, %cst_34 {dimension_numbers = #tpu.dot_dimension_numbers<[1], [0], [0], [1], [0, 0, 1, 1], [], []>} : vector<16x64xbf16>, vector<64x128xbf16>, vector<16x128xf32> -> vector<16x128xf32>
    %c0_35 = arith.constant 0 : index
    %c0_36 = arith.constant 0 : index
    %71 = vector.load %arg11[%c0_35, %c0_36] : memref<1x128xf32, #tpu.memory_space<vmem>>, vector<1x128xf32>
    %72 = vector.broadcast %71 : vector<1x128xf32> to vector<16x128xf32>
    %73 = arith.addf %70, %72 : vector<16x128xf32>
    %c0_37 = arith.constant 0 : index
    %c0_38 = arith.constant 0 : index
    %74 = vector.load %arg12[%c0_37, %c0_38] : memref<16x128xf32, #tpu.memory_space<vmem>>, vector<16x128xf32>
    tpu.vector_store %arg12[%c0_37, %c0_38], %73 {strides = array<i32>} : memref<16x128xf32, #tpu.memory_space<vmem>>, vector<16x128xf32>,
    return
  }
  func.func @transform_0(%arg0: i32) -> (i32, i32) {
    %c0_i32 = arith.constant 0 : i32
    %c0_i32_0 = arith.constant 0 : i32
    return %arg0, %c0_i32 : i32, i32
  }
  func.func @transform_1(%arg0: i32) -> (i32, i32) {
    %c0_i32 = arith.constant 0 : i32
    %c0_i32_0 = arith.constant 0 : i32
    %c0_i32_1 = arith.constant 0 : i32
    return %c0_i32, %c0_i32_0 : i32, i32
  }
  func.func @transform_2(%arg0: i32) -> (i32, i32) {
    %c0_i32 = arith.constant 0 : i32
    %c0_i32_0 = arith.constant 0 : i32
    %c0_i32_1 = arith.constant 0 : i32
    return %c0_i32, %c0_i32_0 : i32, i32
  }
  func.func @transform_3(%arg0: i32) -> (i32, i32) {
    %c0_i32 = arith.constant 0 : i32
    %c0_i32_0 = arith.constant 0 : i32
    %c0_i32_1 = arith.constant 0 : i32
    return %c0_i32, %c0_i32_0 : i32, i32
  }
  func.func @transform_4(%arg0: i32) -> (i32, i32) {
    %c0_i32 = arith.constant 0 : i32
    %c0_i32_0 = arith.constant 0 : i32
    %c0_i32_1 = arith.constant 0 : i32
    return %c0_i32, %c0_i32_0 : i32, i32
  }
  func.func @transform_5(%arg0: i32) -> (i32, i32) {
    %c0_i32 = arith.constant 0 : i32
    %c0_i32_0 = arith.constant 0 : i32
    %c0_i32_1 = arith.constant 0 : i32
    return %c0_i32, %c0_i32_0 : i32, i32
  }
  func.func @transform_6(%arg0: i32) -> (i32, i32) {
    %c0_i32 = arith.constant 0 : i32
    %c0_i32_0 = arith.constant 0 : i32
    %c0_i32_1 = arith.constant 0 : i32
    return %c0_i32, %c0_i32_0 : i32, i32
  }
  func.func @transform_7(%arg0: i32) -> (i32, i32) {
    %c0_i32 = arith.constant 0 : i32
    %c0_i32_0 = arith.constant 0 : i32
    %c0_i32_1 = arith.constant 0 : i32
    return %c0_i32, %c0_i32_0 : i32, i32
  }
  func.func @transform_8(%arg0: i32) -> (i32, i32) {
    %c0_i32 = arith.constant 0 : i32
    %c0_i32_0 = arith.constant 0 : i32
    %c0_i32_1 = arith.constant 0 : i32
    return %c0_i32, %c0_i32_0 : i32, i32
  }
  func.func @transform_9(%arg0: i32) -> (i32, i32) {
    %c0_i32 = arith.constant 0 : i32
    %c0_i32_0 = arith.constant 0 : i32
    %c0_i32_1 = arith.constant 0 : i32
    return %c0_i32, %c0_i32_0 : i32, i32
  }
  func.func @transform_10(%arg0: i32) -> (i32, i32) {
    %c0_i32 = arith.constant 0 : i32
    %c0_i32_0 = arith.constant 0 : i32
    %c0_i32_1 = arith.constant 0 : i32
    return %c0_i32, %c0_i32_0 : i32, i32
  }
  func.func @transform_11(%arg0: i32) -> (i32, i32) {
    %c0_i32 = arith.constant 0 : i32
    %c0_i32_0 = arith.constant 0 : i32
    return %arg0, %c0_i32 : i32, i32
  }
}

</mosaic_0001>

<bundles_post_ra>
// kernel: tpu_custom_call.1
= control target key start
LH: loop header
LB: loop body
LE: loop exit
PB: predicated region body
PF: predicated region fallthrough
CT: control target
= control target key end

     0   :  { %16 = vsyncpa [#allocation3], 0  ;;  %s994_s0 = inlined_call_operand.hbm [shape: bf16[16,32], index: 0, kind: input, shape index: {}]   ;;  %s995_s1 = inlined_call_operand.hbm [shape: bf16[32,32], index: 1, kind: input, shape index: {}]   ;;  %s996_s2 = inlined_call_operand.vmem [shape: f32[1,32], index: 2, kind: input, shape index: {}]   ;;  %s997_s3 = inlined_call_operand.vmem [shape: f32[1,32], index: 3, kind: input, shape index: {}]   ;;  %s998_s4 = inlined_call_operand.hbm [shape: f32[1,32], index: 4, kind: input, shape index: {}]   ;;  %s999_s5 = inlined_call_operand.hbm [shape: bf16[32,64], index: 5, kind: input, shape index: {}]   ;;  %s1000_s6 = inlined_call_operand.hbm [shape: f32[1,64], index: 6, kind: input, shape index: {}]   ;;  %s1001_s7 = inlined_call_operand.hbm [shape: f32[1,64], index: 7, kind: input, shape index: {}]   ;;  %s1002_s8 = inlined_call_operand.hbm [shape: f32[1,64], index: 8, kind: input, shape index: {}]   ;;  %s1003_s9 = inlined_call_operand.vmem [shape: bf16[64,128], index: 9, kind: input, shape index: {}]   ;;  %s1004_s10 = inlined_call_operand.vmem [shape: f32[1,128], index: 10, kind: input, shape index: {}]   ;;  %s1005_s11 = inlined_call_operand.hbm [shape: f32[16,128], index: 11, kind: output, shape index: {}]  }
   0x1   :  { %17 = vsyncpa [#allocation6], 0 }
   0x2   :  { %18 = vsyncpa [#allocation9], 0 }
   0x3   :  { %19 = vsyncpa [#allocation12], 0 }
   0x4   :  { %20 = vsyncpa [#allocation4], 0  ;;  %s758_s17 = smov [#allocation5]   ;;  %s759_s19 = smov [#allocation8]  }
   0x5   :  { %s38_s18 = sshll.u32 %s758_s17, 4  ;;  %s64_s20 = sshll.u32 %s759_s19, 4  ;;  %s39_s18 = int_to_ptr.vmem [resolvable:$true] %s38_s18  ;;  %s832_s20 = int_to_ptr.vmem [resolvable:$true] %s64_s20 }
   0x6   :  { %s572_s23 = scalar_lea.hbm %s995_s1, 256 }
   0x7   :  { %p573_p0 = scmp.ne.s32.totalorder %s995_s1, %s572_s23  ;;  %p576_p1 = scmp.lt.u32.totalorder %s572_s23, %s995_s1 }
   0x9   :  { %p578_p2 = pnand %p576_p1, %p573_p0 }
   0xb   :  { %581 = shalt.err (!%p578_p2)
}
   0xc   :  { %s582_s28 = scalar_lea.vmem %s39_s18, 256  ;;  %p587_p4 = scmp.lt.s32.totalorder %s39_s18, %s39_s18 }
   0xd   :  { %p583_p3 = scmp.ne.s32.totalorder %s39_s18, %s582_s28  ;;  %p588_p5 = scmp.lt.s32.totalorder %s582_s28, %s582_s28 }
   0xf   :  { %p589_p6 = por %p588_p5, %p587_p4 }
  0x11   :  { %p590_p7 = pnand %p589_p6, %p583_p3 }
  0x13   :  { %593 = shalt.err (!%p590_p7)
}
  0x14   :  { %s760_s29 = smov 64   ;;  %s761_s30 = smov 4  }
  0x15   :  { %44 = dma.hbm_to_vmem [thread:$0]  %s995_s1, 256, %s39_s18, [#allocation6], %s760_s29, %s760_s29, %s761_s30  }
  0x16   :  { %s594_s16 = scalar_lea.hbm %s999_s5, 256 }
  0x17   :  { %p595_p8 = scmp.ne.s32.totalorder %s999_s5, %s594_s16  ;;  %p598_p9 = scmp.lt.u32.totalorder %s594_s16, %s999_s5 }
  0x19   :  { %p600_p10 = pnand %p598_p9, %p595_p8 }
  0x1b   :  { %603 = shalt.err (!%p600_p10)
}
  0x1c   :  { %s604_s23 = scalar_lea.vmem %s832_s20, 256  ;;  %p609_p12 = scmp.lt.s32.totalorder %s832_s20, %s832_s20 }
  0x1d   :  { %p605_p11 = scmp.ne.s32.totalorder %s832_s20, %s604_s23  ;;  %p610_p13 = scmp.lt.s32.totalorder %s604_s23, %s604_s23 }
  0x1f   :  { %p611_p0 = por %p610_p13, %p609_p12 }
  0x21   :  { %p612_p1 = pnand %p611_p0, %p605_p11 }
  0x23   :  { %615 = shalt.err (!%p612_p1)
}
  0x24   :  { %70 = dma.hbm_to_vmem [thread:$0]  %s999_s5, 256, %s832_s20, [#allocation9], %s760_s29, %s760_s29, %s761_s30  }
  0x25   :  { %s762_s24 = smov [#allocation11]   ;;  %s763_s26 = smov [#allocation2]  }
  0x26   :  { %s87_s25 = sshll.u32 %s762_s24, 4  ;;  %s26_s27 = sshll.u32 %s763_s26, 4  ;;  %s88_s25 = int_to_ptr.vmem [resolvable:$true] %s87_s25  ;;  %s869_s27 = int_to_ptr.vmem [resolvable:$true] %s26_s27 }
  0x27   :  { %s616_s13 = scalar_lea.hbm %s1001_s7, 16 }
  0x28   :  { %p617_p2 = scmp.ne.s32.totalorder %s1001_s7, %s616_s13  ;;  %p620_p3 = scmp.lt.u32.totalorder %s616_s13, %s1001_s7 }
  0x2a   :  { %p622_p4 = pnand %p620_p3, %p617_p2 }
  0x2c   :  { %625 = shalt.err (!%p622_p4)
}
  0x2d   :  { %s626_s5 = scalar_lea.vmem %s88_s25, 16  ;;  %s630_s20 = scalar_lea.vmem %s88_s25, 32 }
  0x2e   :  { %p627_p5 = scmp.ne.s32.totalorder %s88_s25, %s626_s5  ;;  %p631_p6 = scmp.lt.s32.totalorder %s88_s25, %s88_s25 }
  0x2f   :  { %p632_p7 = scmp.lt.s32.totalorder %s630_s20, %s626_s5 }
  0x31   :  { %p633_p8 = por %p632_p7, %p631_p6 }
  0x33   :  { %p634_p9 = pnand %p633_p8, %p627_p5 }
  0x35   :  { %637 = shalt.err (!%p634_p9)
}
  0x36   :  { %90 = dma.hbm_to_vmem [thread:$0]  %s1001_s7, 16, %s88_s25, [#allocation12]  }
  0x37   :  { %s638_s1 = scalar_lea.hbm %s994_s0, 128 }
  0x38   :  { %p639_p10 = scmp.ne.s32.totalorder %s994_s0, %s638_s1  ;;  %p642_p11 = scmp.lt.u32.totalorder %s638_s1, %s994_s0 }
  0x3a   :  { %p644_p12 = pnand %p642_p11, %p639_p10 }
  0x3c   :  { %647 = shalt.err (!%p644_p12)
}
  0x3d   :  { %s648_s12 = scalar_lea.vmem %s869_s27, 128  ;;  %p653_p0 = scmp.lt.s32.totalorder %s869_s27, %s869_s27 }
  0x3e   :  { %p649_p13 = scmp.ne.s32.totalorder %s869_s27, %s648_s12  ;;  %p654_p1 = scmp.lt.s32.totalorder %s648_s12, %s648_s12 }
  0x40   :  { %p655_p2 = por %p654_p1, %p653_p0 }
  0x42   :  { %p656_p3 = pnand %p655_p2, %p649_p13 }
  0x44   :  { %659 = shalt.err (!%p656_p3)
}
  0x45   :  { %32 = dma.hbm_to_vmem [thread:$0]  %s994_s0, 128, %s869_s27, [#allocation3], %s760_s29, %s760_s29, %s761_s30  }
  0x46   :  { %s764_s13 = smov [#allocation7]   ;;  %s765_s15 = smov [#allocation10]  }
  0x47   :  { %s55_s14 = sshll.u32 %s764_s13, 4  ;;  %s77_s16 = sshll.u32 %s765_s15, 4  ;;  %s56_s14 = int_to_ptr.vmem [resolvable:$true] %s55_s14  ;;  %s78_s16 = int_to_ptr.vmem [resolvable:$true] %s77_s16 }
  0x48   :  { %s660_s20 = scalar_lea.hbm %s998_s4, 16 }
  0x49   :  { %p661_p4 = scmp.ne.s32.totalorder %s998_s4, %s660_s20  ;;  %p664_p5 = scmp.lt.u32.totalorder %s660_s20, %s998_s4 }
  0x4b   :  { %p666_p6 = pnand %p664_p5, %p661_p4 }
  0x4d   :  { %669 = shalt.err (!%p666_p6)
}
  0x4e   :  { %s670_s0 = scalar_lea.vmem %s56_s14, 16  ;;  %s674_s29 = scalar_lea.vmem %s56_s14, 32 }
  0x4f   :  { %p671_p7 = scmp.ne.s32.totalorder %s56_s14, %s670_s0  ;;  %p675_p8 = scmp.lt.s32.totalorder %s56_s14, %s56_s14 }
  0x50   :  { %p676_p9 = scmp.lt.s32.totalorder %s674_s29, %s670_s0 }
  0x52   :  { %p677_p10 = por %p676_p9, %p675_p8 }
  0x54   :  { %p678_p11 = pnand %p677_p10, %p671_p7 }
  0x56   :  { %681 = shalt.err (!%p678_p11)
}
  0x57   :  { %58 = dma.hbm_to_vmem [thread:$0]  %s998_s4, 16, %s56_s14, [#allocation6]  }
  0x58   :  { %s682_s24 = scalar_lea.hbm %s1000_s6, 16 }
  0x59   :  { %p683_p12 = scmp.ne.s32.totalorder %s1000_s6, %s682_s24  ;;  %p686_p13 = scmp.lt.u32.totalorder %s682_s24, %s1000_s6 }
  0x5b   :  { %p688_p0 = pnand %p686_p13, %p683_p12 }
  0x5d   :  { %691 = shalt.err (!%p688_p0)
}
  0x5e   :  { %s692_s25 = scalar_lea.vmem %s78_s16, 16  ;;  %s696_s13 = scalar_lea.vmem %s78_s16, 32 }
  0x5f   :  { %p693_p1 = scmp.ne.s32.totalorder %s78_s16, %s692_s25  ;;  %p697_p2 = scmp.lt.s32.totalorder %s78_s16, %s78_s16 }
  0x60   :  { %p698_p3 = scmp.lt.s32.totalorder %s696_s13, %s692_s25 }
  0x62   :  { %p699_p4 = por %p698_p3, %p697_p2 }
  0x64   :  { %p700_p5 = pnand %p699_p4, %p693_p1 }
  0x66   :  { %703 = shalt.err (!%p700_p5)
}
  0x67   :  { %80 = dma.hbm_to_vmem [thread:$0]  %s1000_s6, 16, %s78_s16, [#allocation9]  }
  0x68   :  { %s766_s15 = smov [#allocation13]   ;;  %s704_s19 = scalar_lea.hbm %s1002_s8, 16 }
  0x69   :  { %s97_s17 = sshll.u32 %s766_s15, 4  ;;  %p705_p6 = scmp.ne.s32.totalorder %s1002_s8, %s704_s19  ;;  %s98_s17 = int_to_ptr.vmem [resolvable:$true] %s97_s17 }
  0x6a   :  { %p708_p7 = scmp.lt.u32.totalorder %s704_s19, %s1002_s8 }
  0x6c   :  { %p710_p8 = pnand %p708_p7, %p705_p6 }
  0x6e   :  { %713 = shalt.err (!%p710_p8)
}
  0x6f   :  { %s714_s29 = scalar_lea.vmem %s98_s17, 16  ;;  %s718_s6 = scalar_lea.vmem %s98_s17, 32 }
  0x70   :  { %p715_p9 = scmp.ne.s32.totalorder %s98_s17, %s714_s29  ;;  %p719_p10 = scmp.lt.s32.totalorder %s98_s17, %s98_s17 }
  0x71   :  { %p720_p11 = scmp.lt.s32.totalorder %s718_s6, %s714_s29 }
  0x73   :  { %p721_p12 = por %p720_p11, %p719_p10 }
  0x75   :  { %p722_p13 = pnand %p721_p12, %p715_p9 }
  0x77   :  { %725 = shalt.err (!%p722_p13)
}
  0x78   :  { %100 = dma.hbm_to_vmem [thread:$0]  %s1002_s8, 16, %s98_s17, [#allocation12]  }
  0x79   :  { %748 = dma.done.wait [#allocation3], 128  }
  0x7a   :  { %749 = vsyncadd [#allocation3], 4294967168 }
  0x7b   :  { %750 = dma.done.wait [#allocation6], 272  }
  0x7c   :  { %751 = vsyncadd [#allocation6], 4294967024 }
  0x7d   :  { %752 = dma.done.wait [#allocation9], 272  }
  0x7e   :  { %753 = vsyncadd [#allocation9], 4294967024 }
  0x7f   :  { %754 = dma.done.wait [#allocation12], 32  }
  0x80   :  { %755 = vsyncadd [#allocation12], 4294967264  ;;  %v767_v0 = vmov 0.0   ;;  %vm768_vm0 = vmmov 0   ;;  %v555_v1 = vld [vmem:[#allocation5] sm:$0xff]   ;;  %v556_v2 = vld [vmem:[#allocation5 + $0x8] sm:$0xff]  }
  0x81   :  { %513 = vmatprep.subr.bf16.mxu1 %v767_v0  ;;  %517 = vmatprep.mubr.msk.bf16.mxu1 %vm768_vm0, %v767_v0  ;;  %v557_v3 = vld [vmem:[#allocation2] sm:$0xff]   ;;  %vm157_vm1 = vcmask 261120   ;;  %v489_v42 = vld [vmem:[#allocation7] ss:$0 sm:$0xff]  ;;  %v490_v50 = vld [vmem:[#allocation10] ss:$0 sm:$0xff] }
  0x82   :  { %529 = vmatprep.subr.bf16.mxu0 %v767_v0  ;;  %537 = vmatprep.mubr.msk.bf16.mxu0 %vm768_vm0, %v767_v0  ;;  %v483_v4 = vld [vmem:[%s996_s2] ss:$0 sm:$0xff]  ;;  %v559_v18 = vld [vmem:[#allocation8 + $0x8] sm:$0xff]   ;;  %vm323_vm2 = vcmask 523264   ;;  %s769_s4 = smov [#allocation14]  }
  0x83   :  { %514 = vmatpush3.bf16.msra.mxu1 %v555_v1  ;;  %v558_v17 = vld [vmem:[#allocation8] sm:$0xff]   ;;  %v561_v1 = vld [vmem:[%s1003_s9 + $0x8] sm:$0xff]   ;;  %s468_s14 = sshll.u32 %s769_s4, 4  ;;  %s469_s14 = int_to_ptr.vmem [resolvable:$true] %s468_s14 }
  0x84   :  { %515 = vmatprep.subr.bf16.mxu1 %v767_v0  ;;  %v488_v37 = vld [vmem:[%s997_s3] ss:$0 sm:$0xff]  ;;  %s726_s15 = scalar_lea.vmem %s469_s14, 256  ;;  %p731_p1 = scmp.lt.s32.totalorder %s469_s14, %s469_s14 }
  0x85   :  { %v560_v63 = vld [vmem:[%s1003_s9] sm:$0xff]   ;;  %p727_p0 = scmp.ne.s32.totalorder %s469_s14, %s726_s15  ;;  %p732_p2 = scmp.lt.s32.totalorder %s726_s15, %s726_s15 }
  0x86   :  { %530 = vmatpush3.bf16.msra.mxu0 %v560_v63 }
  0x87   :  { %516 = vmatpush3.bf16.msra.mxu1 %v556_v2  ;;  %531 = vmatprep.subr.bf16.mxu0 %v767_v0  ;;  %v562_v2 = vld [vmem:[%s1003_s9 + $0x10] sm:$0xff]   ;;  %p733_p3 = por %p732_p2, %p731_p1 }
  0x88   :  { %521 = vmatprep.subr.bf16.mxu1 %v767_v0 }
  0x89   :  { %p734_p4 = pnand %p733_p3, %p727_p0 }
  0x8a   :  { %518 = vmatmul.mubr.msk.bf16.vlgmr.msra.gmra.mrb[0].mxu1 %vm157_vm1, %v557_v3  ;;  %532 = vmatpush3.bf16.msra.mxu0 %v561_v1  ;;  %v563_v3 = vld [vmem:[%s1003_s9 + $0x18] sm:$0xff]  }
  0x8b   :  { %525 = vmatprep.mubr.msk.bf16.mxu1 %vm768_vm0, %v767_v0  ;;  %522 = vmatpush3.bf16.msra.mxu1 %v558_v17 }
  0x8c   :  { %523 = vmatprep.subr.bf16.mxu1 %v767_v0  ;;  %533 = vmatprep.subr.bf16.mxu0 %v767_v0 }
  0x8e   :  { %534 = vmatpush3.bf16.msra.mxu0 %v562_v2 }
  0x8f   :  { %524 = vmatpush3.bf16.msra.mxu1 %v559_v18  ;;  %535 = vmatprep.subr.bf16.mxu0 %v767_v0 }
  0x92   :  { %536 = vmatpush3.bf16.msra.mxu0 %v563_v3 }
 0x15d   :  { %v195_v5 = vpop.f32.mrb[0].mxu1 }
 0x15e   :  { %v196_v6 = vadd.f32 %v483_v4, %v195_v5  ;;  %v519_v7 = vpop.f32.mrb[1].mxu1 }
 0x15f   :  { %v198_v8 = vpop.f32.mrb[2].mxu1 }
 0x160   :  { %v199_v9 = vadd.f32 %v483_v4, %v198_v8  ;;  %v520_v10 = vpop.f32.mrb[3].mxu1  ;;  %v202_v11 = vsel %vm157_vm1, %v196_v6, 0.0  ;;  %v208_v12 = vmul.f32 %v196_v6, %v196_v6 }
 0x161   :  { %203 = vadd.xlane.f32.xlu0 %v202_v11 }
 0x162   :  { %v210_v13 = vsel %vm157_vm1, %v208_v12, 0.0  ;;  %v209_v14 = vmul.f32 %v199_v9, %v199_v9  ;;  %v205_v15 = vsel %vm157_vm1, %v199_v9, 0.0 }
 0x163   :  { %211 = vadd.xlane.f32.xlu1 %v210_v13 }
 0x164   :  { %v213_v16 = vsel %vm157_vm1, %v209_v14, 0.0 }
 0x165   :  { %206 = vadd.xlane.f32.xlu0 %v205_v15 }
 0x167   :  { %214 = vadd.xlane.f32.xlu1 %v213_v16 }
 0x1ee   :  { %v204_v19 = vpop.xlane.xlu0 %203 }
 0x1ef   :  { %v217_v20 = vmul.f32 0.03125, %v204_v19 }
 0x1f0   :  { %v212_v21 = vpop.xlane.xlu1 %211 }
 0x1f1   :  { %v221_v22 = vmul.f32 %v217_v20, %v217_v20  ;;  %v219_v23 = vmul.f32 0.03125, %v212_v21  ;;  %v227_v35 = vsub.f32 %v196_v6, %v217_v20  ;;  %v494_v21 = vld [vmem:[#allocation11] ss:$0 sm:$0xff] }
 0x1f2   :  { %v207_v24 = vpop.xlane.xlu0 %206 }
 0x1f3   :  { %v223_v25 = vsub.f32 %v219_v23, %v221_v22  ;;  %v218_v26 = vmul.f32 0.03125, %v207_v24 }
 0x1f4   :  { %v215_v27 = vpop.xlane.xlu1 %214 }
 0x1f5   :  { %v225_v28 = vmax.f32 %v223_v25, 0.0  ;;  %v222_v29 = vmul.f32 %v218_v26, %v218_v26  ;;  %v220_v30 = vmul.f32 0.03125, %v215_v27  ;;  %v228_v39 = vsub.f32 %v199_v9, %v218_v26  ;;  %v495_v25 = vld [vmem:[#allocation13] ss:$0 sm:$0xff] }
 0x1f7   :  { %v229_v31 = vadd.f32 1e-05, %v225_v28  ;;  %v224_v32 = vsub.f32 %v220_v30, %v222_v29 }
 0x1f9   :  { %564 = vrsqrt.f32 %v229_v31  ;;  %v226_v33 = vmax.f32 %v224_v32, 0.0 }
 0x1fb   :  { %v230_v34 = vadd.f32 1e-05, %v226_v33 }
 0x1fd   :  { %566 = vrsqrt.f32 %v230_v34  ;;  %v496_v34 = vld [vmem:[%s1004_s10] ss:$0 sm:$0xff] }
 0x203   :  { %v565_v36 = vpop.eup %564 }
 0x204   :  { %v233_v38 = vmul.f32 %v565_v36, %v227_v35 }
 0x206   :  { %v242_v40 = vmul.f32 %v488_v37, %v233_v38 }
 0x207   :  { %v567_v41 = vpop.eup %566 }
 0x208   :  { %v234_v43 = vmul.f32 %v567_v41, %v228_v39  ;;  %v251_v45 = vadd.f32 %v489_v42, %v242_v40 }
 0x20a   :  { %v243_v44 = vmul.f32 %v488_v37, %v234_v43  ;;  %v253_v47 = vmax.f32 %v251_v45, 0.0 }
 0x20c   :  { %v252_v46 = vadd.f32 %v489_v42, %v243_v44 }
 0x20e   :  { %v254_v48 = vmax.f32 %v252_v46, 0.0 }
 0x210   :  { %v255_v49 = vpack.c.bf16 %v254_v48, %v253_v47 }
 0x212   :  { %526 = vmatmul.mubr.msk.bf16.vlgmr.msra.gmra.mrb[4].mxu1 %vm157_vm1, %v255_v49 }
 0x2e5   :  { %v316_v51 = vpop.f32.mrb[4].mxu1 }
 0x2e6   :  { %v317_v52 = vadd.f32 %v490_v50, %v316_v51  ;;  %v527_v53 = vpop.f32.mrb[5].mxu1 }
 0x2e7   :  { %v319_v54 = vpop.f32.mrb[6].mxu1 }
 0x2e8   :  { %v320_v55 = vadd.f32 %v490_v50, %v319_v54  ;;  %v528_v56 = vpop.f32.mrb[7].mxu1  ;;  %v324_v57 = vsel %vm323_vm2, %v317_v52, 0.0  ;;  %v330_v58 = vmul.f32 %v317_v52, %v317_v52 }
 0x2e9   :  { %325 = vadd.xlane.f32.xlu0 %v324_v57 }
 0x2ea   :  { %v327_v59 = vsel %vm323_vm2, %v320_v55, 0.0  ;;  %v331_v60 = vmul.f32 %v320_v55, %v320_v55  ;;  %v332_v61 = vsel %vm323_vm2, %v330_v58, 0.0 }
 0x2eb   :  { %328 = vadd.xlane.f32.xlu1 %v327_v59 }
 0x2ec   :  { %v335_v62 = vsel %vm323_vm2, %v331_v60, 0.0 }
 0x2ed   :  { %333 = vadd.xlane.f32.xlu0 %v332_v61 }
 0x2ef   :  { %336 = vadd.xlane.f32.xlu1 %v335_v62 }
 0x376   :  { %v326_v4 = vpop.xlane.xlu0 %325 }
 0x377   :  { %v339_v5 = vmul.f32 0.015625, %v326_v4 }
 0x378   :  { %v329_v6 = vpop.xlane.xlu1 %328 }
 0x379   :  { %v340_v7 = vmul.f32 0.015625, %v329_v6  ;;  %v343_v9 = vmul.f32 %v339_v5, %v339_v5  ;;  %v349_v0 = vsub.f32 %v317_v52, %v339_v5 }
 0x37a   :  { %v334_v8 = vpop.xlane.xlu0 %333 }
 0x37b   :  { %v341_v10 = vmul.f32 0.015625, %v334_v8  ;;  %v344_v12 = vmul.f32 %v340_v7, %v340_v7  ;;  %v350_v22 = vsub.f32 %v320_v55, %v340_v7 }
 0x37c   :  { %v337_v11 = vpop.xlane.xlu1 %336 }
 0x37d   :  { %v345_v13 = vsub.f32 %v341_v10, %v343_v9  ;;  %v342_v14 = vmul.f32 0.015625, %v337_v11 }
 0x37f   :  { %v347_v15 = vmax.f32 %v345_v13, 0.0  ;;  %v346_v16 = vsub.f32 %v342_v14, %v344_v12 }
 0x381   :  { %v351_v17 = vadd.f32 1e-05, %v347_v15  ;;  %v348_v18 = vmax.f32 %v346_v16, 0.0 }
 0x383   :  { %568 = vrsqrt.f32 %v351_v17  ;;  %v352_v19 = vadd.f32 1e-05, %v348_v18 }
 0x385   :  { %570 = vrsqrt.f32 %v352_v19 }
 0x38d   :  { %v569_v20 = vpop.eup %568 }
 0x38e   :  { %v355_v23 = vmul.f32 %v569_v20, %v349_v0 }
 0x38f   :  { %v571_v24 = vpop.eup %570 }
 0x390   :  { %v356_v26 = vmul.f32 %v571_v24, %v350_v22  ;;  %v364_v27 = vmul.f32 %v494_v21, %v355_v23 }
 0x392   :  { %v365_v28 = vmul.f32 %v494_v21, %v356_v26  ;;  %v373_v29 = vadd.f32 %v495_v25, %v364_v27 }
 0x394   :  { %v374_v30 = vadd.f32 %v495_v25, %v365_v28  ;;  %v375_v31 = vmax.f32 %v373_v29, 0.0 }
 0x396   :  { %v376_v32 = vmax.f32 %v374_v30, 0.0 }
 0x398   :  { %v377_v33 = vpack.c.bf16 %v376_v32, %v375_v31 }
 0x39a   :  { %538 = vmatmul.mubr.msk.bf16.vlgmr.msra.gmra.mrb[0].mxu0 %vm323_vm2, %v377_v33 }
 0x46d   :  { %v454_v35 = vpop.f32.mrb[0].mxu0 }
 0x46e   :  { %v455_v36 = vadd.f32 %v496_v34, %v454_v35  ;;  %v539_v37 = vpop.f32.mrb[1].mxu0 }
 0x46f   :  { %v457_v38 = vpop.f32.mrb[2].mxu0 }
 0x470   :  { %461 = vst [vmem:[#allocation14] sm:$0xff] %v455_v36  ;;  %v458_v39 = vadd.f32 %v496_v34, %v457_v38  ;;  %v540_v40 = vpop.f32.mrb[3].mxu0 }
 0x472   :  { %462 = vst [vmem:[#allocation14 + $0x8] sm:$0xff] %v458_v39 }
 0x473   :  { %737 = shalt.err (!%p734_p4)
}
 0x474   :  { %s738_s5 = scalar_lea.hbm %s1005_s11, 256 }
 0x475   :  { %p739_p5 = scmp.ne.s32.totalorder %s1005_s11, %s738_s5  ;;  %p742_p6 = scmp.lt.u32.totalorder %s738_s5, %s1005_s11 }
 0x477   :  { %p744_p7 = pnand %p742_p6, %p739_p5 }
 0x479   :  { %747 = shalt.err (!%p744_p7)
}
 0x47a   :  { %s770_s23 = smov 128   ;;  %s771_s0 = smov 8  }
 0x47b   :  { %474 = dma.vmem_to_hbm [thread:$0]  %s469_s14, 256, %s1005_s11, [#allocation4], %s770_s23, %s770_s23, %s771_s0  }
 0x47c   :  { %756 = dma.done.wait [#allocation4], 256  }
 0x47d   :  { %757 = vsyncadd [#allocation4], 4294967040 }
 0x47e   :  { %478 = vsyncpa [#allocation3], 1 }
 0x47f   :  { %479 = vsyncpa [#allocation6], 1 }
 0x480   :  { %480 = vsyncpa [#allocation9], 1 }
 0x481   :  { %481 = vsyncpa [#allocation12], 1 }
 0x482   :  { %482 = vsyncpa [#allocation4], 1 }

</bundles_post_ra>
